<compile_context>
chip_gen: v7x
topology: tpu7x:2x2x1
jax: 0.10.0
libtpu: 0.0.40
codegen_flags: <defaults>
</compile_context>

<pallas_src>
import functools
import math

import jax
import jax.numpy as jnp
from jax.experimental import pallas as pl
from jax.experimental.pallas import tpu as pltpu

NEG_SLOPE = 0.2
_LANE = 128
_SUBLANE = 16          # bf16 sublane packing for the M (sublane) dim
_MIB = 1024 * 1024


def _round_up(x, m):
    return ((x + m - 1) // m) * m


def _pick_tile(padded_dim, tile_max):
    """Largest multiple of 128 that divides `padded_dim` and is <= tile_max."""
    q = padded_dim // _LANE
    best = 1
    for d in range(1, q + 1):
        if q % d == 0 and d * _LANE <= tile_max:
            best = d
    return best * _LANE


def _lrelu_linear_kernel(x_ref, w_ref, b_ref, o_ref, acc_ref):
    """One (i, j, k) grid step: acc (+)= x_tile @ w_tile, finalize on last k."""
    k = pl.program_id(2)
    nk = pl.num_programs(2)

    # Canonical MXU orientation: (tm, tk) @ (tk, tn), f32 accumulation.
    prod = jnp.dot(x_ref[...], w_ref[...], preferred_element_type=jnp.float32)

    @pl.when(k == 0)
    def _():
        acc_ref[...] = prod           # direct write: no zero-then-add RMW

    @pl.when(k > 0)
    def _():
        acc_ref[...] += prod

    @pl.when(k == nk - 1)
    def _():
        acc = acc_ref[...] + b_ref[...]          # (1, tn) bias broadcasts
        o_ref[...] = jnp.where(acc >= 0.0, acc, NEG_SLOPE * acc).astype(o_ref.dtype)


def prepare_lrelu_params(weight, bias, *, mxu_dtype=jnp.bfloat16):
    """One-time (init-time) prep, hoisted out of the per-call hot path.

    weight: [out_features, in_features] (PyTorch layout)  ->  padded [K_p, N_p]
    bias:   [out_features]                                ->  padded [1, N_p] f32
    """
    weight = jnp.asarray(weight)
    bias = jnp.asarray(bias)
    out_f, in_f = weight.shape
    k_p = _round_up(in_f, _LANE)
    n_p = _round_up(out_f, _LANE)
    w_kn = weight.T                                   # [in, out] = [K, N]
    if (k_p, n_p) != (in_f, out_f):
        w_kn = jnp.pad(w_kn, ((0, k_p - in_f), (0, n_p - out_f)))
    w_kn = w_kn.astype(mxu_dtype)
    b = bias.astype(jnp.float32)
    if n_p != out_f:
        b = jnp.pad(b, (0, n_p - out_f))
    return w_kn, b.reshape(1, n_p), out_f


@functools.partial(
    jax.jit,
    static_argnames=("out_features", "tm", "tn", "tk", "force_pallas"))
def lrelu_apply(x, w_kn, b_row, *, out_features, tm=512, tn=1024, tk=1024,
                force_pallas=False):
    """x: [..., in_features]; w_kn/b_row from prepare_lrelu_params."""
    orig_shape = x.shape
    in_f = orig_shape[-1]
    k_p, n_p = w_kn.shape
    out_f = out_features
    x2 = x.reshape(-1, in_f)
    m = x2.shape[0]

    # Small-problem fast path: pallas_call fixed cost + pad dominate; let XLA fuse.
    if (not force_pallas) and (2 * m * in_f * out_f) < (1 << 22):
        y = jnp.dot(x2.astype(w_kn.dtype), w_kn[:in_f, :out_f],
                    preferred_element_type=jnp.float32) + b_row[0, :out_f]
        y = jnp.where(y >= 0.0, y, NEG_SLOPE * y).astype(x.dtype)
        return y.reshape(*orig_shape[:-1], out_f)

    # Tile selection (all static). Lane-dim tiles must divide the padded K/N.
    tn_t = _pick_tile(n_p, tn)
    tk_t = _pick_tile(k_p, tk)
    tm_t = min(tm, _round_up(m, _SUBLANE))
    m_p = _round_up(m, tm_t)

    # v7x megacore: guarantee >=2 blocks along a "parallel" axis when possible.
    if (m_p // tm_t) == 1 and (n_p // tn_t) == 1 and (n_p // _LANE) >= 2:
        tn_t = _pick_tile(n_p, n_p // 2)

    grid = (m_p // tm_t, n_p // tn_t, k_p // tk_t)

    x_p = x2.astype(w_kn.dtype)
    if (m_p, k_p) != (m, in_f):
        x_p = jnp.pad(x_p, ((0, m_p - m), (0, k_p - in_f)))

    out_dtype = x.dtype
    out_bytes = jnp.dtype(out_dtype).itemsize
    w_bytes = jnp.dtype(w_kn.dtype).itemsize

    # Explicit VMEM budget: 2x double-buffered x/w/bias/out tiles + f32 acc.
    # Cap at 56 MiB (v7x has 64 MiB / TensorCore); floor at 32 MiB.
    vmem_budget = (2 * tm_t * tk_t * w_bytes + 2 * tk_t * tn_t * w_bytes
                   + 2 * tn_t * 4 + 2 * tm_t * tn_t * out_bytes
                   + tm_t * tn_t * 4)
    vmem_limit = int(min(56 * _MIB, max(32 * _MIB, int(vmem_budget * 1.5))))

    flops = 2 * m_p * k_p * n_p
    bytes_accessed = (m_p * k_p * w_bytes + k_p * n_p * w_bytes
                      + n_p * 4 + m_p * n_p * out_bytes)

    out = pl.pallas_call(
        _lrelu_linear_kernel,
        out_shape=jax.ShapeDtypeStruct((m_p, n_p), out_dtype),
        grid_spec=pltpu.PrefetchScalarGridSpec(
            num_scalar_prefetch=0,
            grid=grid,
            in_specs=[
                pl.BlockSpec((tm_t, tk_t), lambda i, j, k: (i, k)),   # x  [M, K]
                pl.BlockSpec((tk_t, tn_t), lambda i, j, k: (k, j)),   # w  [K, N]
                pl.BlockSpec((1, tn_t), lambda i, j, k: (0, j)),      # bias
            ],
            out_specs=pl.BlockSpec((tm_t, tn_t), lambda i, j, k: (i, j)),
            scratch_shapes=[pltpu.VMEM((tm_t, tn_t), jnp.float32)],
        ),
        compiler_params=pltpu.CompilerParams(
            dimension_semantics=("parallel", "parallel", "arbitrary"),
            vmem_limit_bytes=vmem_limit),
        cost_estimate=pl.CostEstimate(
            flops=flops, transcendentals=0, bytes_accessed=bytes_accessed),
    )(x_p, w_kn, b_row)

    if (m_p, n_p) != (m, out_f):
        out = out[:m, :out_f]
    return out.reshape(*orig_shape[:-1], out_f)


def lrelu_layer(x, weight, bias, **kwargs):
    """Convenience wrapper taking PyTorch-layout weight [out, in].

    For repeated use (training / inference loops), call prepare_lrelu_params
    once at init and lrelu_apply per step so the transpose/pad/cast stays out
    of the hot path.
    """
    w_kn, b_row, out_f = prepare_lrelu_params(weight, bias)
    return lrelu_apply(x, w_kn, b_row, out_features=out_f, **kwargs)


def init_params(key, in_features, out_features):
    # Mirrors LReLULayer.init_weights: weight ~ U(-gain, gain),
    # gain = calculate_gain('leaky_relu', 0.2) = sqrt(2 / (1 + 0.2**2)).
    gain = math.sqrt(2.0 / (1.0 + 0.2 ** 2))
    kw, kb = jax.random.split(key)
    weight = jax.random.uniform(
        kw, (out_features, in_features), jnp.float32, minval=-gain, maxval=gain)
    # Bias keeps PyTorch's default Linear init: U(-1/sqrt(in), 1/sqrt(in)).
    bound = 1.0 / math.sqrt(in_features)
    bias = jax.random.uniform(
        kb, (out_features,), jnp.float32, minval=-bound, maxval=bound)
    return weight, bias


if __name__ == "__main__":
    key = jax.random.PRNGKey(0)
    k_x, k_p1, k_p2, k_p3 = jax.random.split(key, 4)

    def ref_fn(x, w, b):
        # Reference with the same bf16 MXU-input rounding, f32 math.
        xf = x.astype(jnp.bfloat16).astype(jnp.float32)
        wf = w.astype(jnp.bfloat16).astype(jnp.float32)
        y = xf @ wf.T + b
        return jnp.where(y >= 0.0, y, NEG_SLOPE * y)

    # Case 1: small module-like shapes (8 x 32 -> 32).
    x1 = jax.random.normal(k_x, (8, 32), dtype=jnp.float32)
    w1, b1 = init_params(k_p1, 32, 32)
    o1 = jax.block_until_ready(lrelu_layer(x1, w1, b1, force_pallas=True))
    assert o1.shape == (8, 32)
    assert jnp.allclose(o1, ref_fn(x1, w1, b1), atol=1e-2, rtol=1e-2)

    # Case 2: unaligned in/out features + leading batch dims (pad/slice path,
    # megacore N-split engages since the M/N grid would otherwise be (1, 1)).
    x2 = jax.random.normal(k_x, (2, 4, 96), dtype=jnp.float32)
    w2, b2 = init_params(k_p2, 96, 160)
    o2 = jax.block_until_ready(lrelu_layer(x2, w2, b2, force_pallas=True))
    assert o2.shape == (2, 4, 160)
    assert jnp.allclose(o2.reshape(-1, 160),
                        ref_fn(x2.reshape(-1, 96), w2, b2), atol=1e-2, rtol=1e-2)

    # Case 3: multi-step K reduction (tk=128 over K=256) exercises the
    # k==0 write / k>0 accumulate / last-k epilogue path.
    x3 = jax.random.normal(k_x, (16, 256), dtype=jnp.float32)
    w3, b3 = init_params(k_p3, 256, 128)
    o3 = jax.block_until_ready(lrelu_layer(x3, w3, b3, tk=128, force_pallas=True))
    assert o3.shape == (16, 128)
    assert jnp.allclose(o3, ref_fn(x3, w3, b3), atol=1e-2, rtol=1e-2)

    print("KERNEL_OK")
</pallas_src>

<mosaic_0001>
module attributes {stable_mosaic.version = 11 : i64} {
  func.func @_lrelu_linear_kernel(%arg0: i32, %arg1: i32, %arg2: i32, %arg3: memref<16x128xbf16, #tpu.memory_space<vmem>>, %arg4: memref<128x128xbf16, #tpu.memory_space<vmem>>, %arg5: memref<1x128xf32, #tpu.memory_space<vmem>>, %arg6: memref<16x128xf32, #tpu.memory_space<vmem>>, %arg7: memref<16x128xf32, #tpu.memory_space<vmem>>) attributes {dimension_semantics = [#tpu.dimension_semantics<parallel>, #tpu.dimension_semantics<parallel>, #tpu.dimension_semantics<arbitrary>], iteration_bounds = array<i64: 1, 1, 1>, scalar_prefetch = 0 : i64, scratch_operands = 1 : i64, tpu.core_type = #tpu.core_type<tc>, window_params = [{transform_indices = @transform_0, window_bounds = array<i64: 16, 128>}, {transform_indices = @transform_1, window_bounds = array<i64: 128, 128>}, {transform_indices = @transform_2, window_bounds = array<i64: 1, 128>}, {transform_indices = @transform_3, window_bounds = array<i64: 16, 128>}]} {
    %c0 = arith.constant 0 : index
    %c0_0 = arith.constant 0 : index
    %0 = vector.load %arg3[%c0, %c0_0] : memref<16x128xbf16, #tpu.memory_space<vmem>>, vector<16x128xbf16>
    %c0_1 = arith.constant 0 : index
    %c0_2 = arith.constant 0 : index
    %1 = vector.load %arg4[%c0_1, %c0_2] : memref<128x128xbf16, #tpu.memory_space<vmem>>, vector<128x128xbf16>
    %cst = arith.constant dense<0.000000e+00> : vector<16x128xf32>
    %2 = tpu.matmul %0, %1, %cst {dimension_numbers = #tpu.dot_dimension_numbers<[1], [0], [0], [1], [0, 0, 1, 1], [], []>} : vector<16x128xbf16>, vector<128x128xbf16>, vector<16x128xf32> -> vector<16x128xf32>
    %c0_i32 = arith.constant 0 : i32
    %3 = arith.cmpi eq, %arg2, %c0_i32 : i32
    %4 = arith.extui %3 : i1 to i32
    %c0_i32_3 = arith.constant 0 : i32
    %5 = arith.cmpi ne, %4, %c0_i32_3 : i32
    scf.if %5 {
      %c0_8 = arith.constant 0 : index
      %c0_9 = arith.constant 0 : index
      %12 = vector.load %arg7[%c0_8, %c0_9] : memref<16x128xf32, #tpu.memory_space<vmem>>, vector<16x128xf32>
      tpu.vector_store %arg7[%c0_8, %c0_9], %2 {strides = array<i32>} : memref<16x128xf32, #tpu.memory_space<vmem>>, vector<16x128xf32>,
    } else {
    }
    %c0_i32_4 = arith.constant 0 : i32
    %6 = arith.cmpi sgt, %arg2, %c0_i32_4 : i32
    %7 = arith.extui %6 : i1 to i32
    %c0_i32_5 = arith.constant 0 : i32
    %8 = arith.cmpi ne, %7, %c0_i32_5 : i32
    scf.if %8 {
      %c0_8 = arith.constant 0 : index
      %c0_9 = arith.constant 0 : index
      %12 = vector.load %arg7[%c0_8, %c0_9] : memref<16x128xf32, #tpu.memory_space<vmem>>, vector<16x128xf32>
      %13 = arith.addf %12, %2 : vector<16x128xf32>
      %c0_10 = arith.constant 0 : index
      %c0_11 = arith.constant 0 : index
      %14 = vector.load %arg7[%c0_10, %c0_11] : memref<16x128xf32, #tpu.memory_space<vmem>>, vector<16x128xf32>
      tpu.vector_store %arg7[%c0_10, %c0_11], %13 {strides = array<i32>} : memref<16x128xf32, #tpu.memory_space<vmem>>, vector<16x128xf32>,
    } else {
    }
    %c0_i32_6 = arith.constant 0 : i32
    %9 = arith.cmpi eq, %arg2, %c0_i32_6 : i32
    %10 = arith.extui %9 : i1 to i32
    %c0_i32_7 = arith.constant 0 : i32
    %11 = arith.cmpi ne, %10, %c0_i32_7 : i32
    scf.if %11 {
      %c0_8 = arith.constant 0 : index
      %c0_9 = arith.constant 0 : index
      %12 = vector.load %arg7[%c0_8, %c0_9] : memref<16x128xf32, #tpu.memory_space<vmem>>, vector<16x128xf32>
      %c0_10 = arith.constant 0 : index
      %c0_11 = arith.constant 0 : index
      %13 = vector.load %arg5[%c0_10, %c0_11] : memref<1x128xf32, #tpu.memory_space<vmem>>, vector<1x128xf32>
      %14 = vector.broadcast %13 : vector<1x128xf32> to vector<16x128xf32>
      %15 = arith.addf %12, %14 : vector<16x128xf32>
      %cst_12 = arith.constant 0.000000e+00 : f32
      %16 = vector.broadcast %cst_12 : f32 to vector<16x128xf32>
      %17 = arith.cmpf oge, %15, %16 : vector<16x128xf32>
      %cst_13 = arith.constant 2.000000e-01 : f32
      %18 = vector.broadcast %cst_13 : f32 to vector<16x128xf32>
      %19 = arith.mulf %18, %15 : vector<16x128xf32>
      %20 = arith.select %17, %15, %19 : vector<16x128xi1>, vector<16x128xf32>
      %c0_14 = arith.constant 0 : index
      %c0_15 = arith.constant 0 : index
      %21 = vector.load %arg6[%c0_14, %c0_15] : memref<16x128xf32, #tpu.memory_space<vmem>>, vector<16x128xf32>
      tpu.vector_store %arg6[%c0_14, %c0_15], %20 {strides = array<i32>} : memref<16x128xf32, #tpu.memory_space<vmem>>, vector<16x128xf32>,
    } else {
    }
    return
  }
  func.func @transform_0(%arg0: i32, %arg1: i32, %arg2: i32) -> (i32, i32) {
    %c0_i32 = arith.constant 0 : i32
    return %arg0, %arg2 : i32, i32
  }
  func.func @transform_1(%arg0: i32, %arg1: i32, %arg2: i32) -> (i32, i32) {
    %c0_i32 = arith.constant 0 : i32
    return %arg2, %arg1 : i32, i32
  }
  func.func @transform_2(%arg0: i32, %arg1: i32, %arg2: i32) -> (i32, i32) {
    %c0_i32 = arith.constant 0 : i32
    %c0_i32_0 = arith.constant 0 : i32
    return %c0_i32, %arg1 : i32, i32
  }
  func.func @transform_3(%arg0: i32, %arg1: i32, %arg2: i32) -> (i32, i32) {
    %c0_i32 = arith.constant 0 : i32
    return %arg0, %arg1 : i32, i32
  }
}

</mosaic_0001>

<bundles_post_ra>
// kernel: lrelu_apply.1
= control target key start
LH: loop header
LB: loop body
LE: loop exit
PB: predicated region body
PF: predicated region fallthrough
CT: control target
= control target key end

     0   :  { %8 = vsyncpa [#allocation4], 0  ;;  %s262_s12 = smov [#allocation3]   ;;  %s311_s0 = inlined_call_operand.vmem [shape: bf16[16,128], index: 0, kind: input, shape index: {}]   ;;  %s312_s1 = inlined_call_operand.hbm [shape: bf16[128,128], index: 1, kind: input, shape index: {}]   ;;  %s313_s2 = inlined_call_operand.vmem [shape: f32[1,128], index: 2, kind: input, shape index: {}]   ;;  %s314_s3 = inlined_call_operand.vmem [shape: f32[16,128], index: 3, kind: output, shape index: {}]  }
   0x1   :  { %s16_s13 = sshll.u32 %s262_s12, 4  ;;  %s238_s16 = scalar_lea.hbm %s312_s1, 1024  ;;  %s17_s13 = int_to_ptr.vmem [resolvable:$true] %s16_s13 }
   0x2   :  { %p239_p0 = scmp.ne.s32.totalorder %s312_s1, %s238_s16  ;;  %p242_p1 = scmp.lt.u32.totalorder %s238_s16, %s312_s1 }
   0x4   :  { %p244_p2 = pnand %p242_p1, %p239_p0 }
   0x6   :  { %247 = shalt.err (!%p244_p2)
}
   0x7   :  { %s248_s21 = scalar_lea.vmem %s17_s13, 1024  ;;  %p253_p4 = scmp.lt.s32.totalorder %s17_s13, %s17_s13 }
   0x8   :  { %p249_p3 = scmp.ne.s32.totalorder %s17_s13, %s248_s21  ;;  %p254_p5 = scmp.lt.s32.totalorder %s248_s21, %s248_s21 }
   0xa   :  { %p255_p6 = por %p254_p5, %p253_p4 }
   0xc   :  { %p256_p7 = pnand %p255_p6, %p249_p3 }
   0xe   :  { %259 = shalt.err (!%p256_p7)
}
   0xf   :  { %s263_s22 = smov 64   ;;  %s264_s23 = smov 4  }
  0x10   :  { %22 = dma.hbm_to_vmem [thread:$0]  %s312_s1, 1024, %s17_s13, [#allocation4], %s263_s22, %s263_s22, %s264_s23  }
  0x11   :  { %260 = dma.done.wait [#allocation4], 1024  }
  0x12   :  { %261 = vsyncadd [#allocation4], 4294966272  ;;  %v265_v0 = vmov 0.0   ;;  %vm266_vm0 = vmmov 0   ;;  %v229_v1 = vld [vmem:[#allocation3] sm:$0xff]   ;;  %v230_v2 = vld [vmem:[#allocation3 + $0x8] sm:$0xff]  }
  0x13   :  { %204 = vmatprep.subr.bf16.mxu0 %v265_v0  ;;  %220 = vmatprep.mubr.msk.bf16.mxu0 %vm266_vm0, %v265_v0  ;;  %v231_v3 = vld [vmem:[#allocation3 + $0x10] sm:$0xff]   ;;  %v232_v4 = vld [vmem:[#allocation3 + $0x18] sm:$0xff]   ;;  %v233_v5 = vld [vmem:[#allocation3 + $0x20] sm:$0xff]  }
  0x14   :  { %205 = vmatpush3.bf16.msra.mxu0 %v229_v1  ;;  %v234_v6 = vld [vmem:[#allocation3 + $0x28] sm:$0xff]   ;;  %v235_v7 = vld [vmem:[#allocation3 + $0x30] sm:$0xff]   ;;  %v236_v8 = vld [vmem:[#allocation3 + $0x38] sm:$0xff]  }
  0x15   :  { %206 = vmatprep.subr.bf16.mxu0 %v265_v0  ;;  %v237_v9 = vld [vmem:[%s311_s0] sm:$0xff]  }
  0x16   :  { %v194_v10 = vld [vmem:[%s313_s2] ss:$0 sm:$0xff] }
  0x18   :  { %207 = vmatpush3.bf16.msra.mxu0 %v230_v2 }
  0x19   :  { %208 = vmatprep.subr.bf16.mxu0 %v265_v0 }
  0x1c   :  { %209 = vmatpush3.bf16.msra.mxu0 %v231_v3 }
  0x1d   :  { %210 = vmatprep.subr.bf16.mxu0 %v265_v0 }
  0x20   :  { %211 = vmatpush3.bf16.msra.mxu0 %v232_v4 }
  0x21   :  { %212 = vmatprep.subr.bf16.mxu0 %v265_v0 }
  0x24   :  { %213 = vmatpush3.bf16.msra.mxu0 %v233_v5 }
  0x25   :  { %214 = vmatprep.subr.bf16.mxu0 %v265_v0 }
  0x28   :  { %215 = vmatpush3.bf16.msra.mxu0 %v234_v6 }
  0x29   :  { %216 = vmatprep.subr.bf16.mxu0 %v265_v0 }
  0x2c   :  { %217 = vmatpush3.bf16.msra.mxu0 %v235_v7 }
  0x2d   :  { %218 = vmatprep.subr.bf16.mxu0 %v265_v0 }
  0x30   :  { %219 = vmatpush3.bf16.msra.mxu0 %v236_v8 }
  0x33   :  { %221 = vmatmul.mubr.bf16.vlgmr.msra.gmra.mrb[0].mxu0 %v237_v9 }
 0x106   :  { %v135_v11 = vpop.f32.mrb[0].mxu0 }
 0x107   :  { %v170_v12 = vadd.f32 %v194_v10, %v135_v11  ;;  %v222_v13 = vpop.f32.mrb[1].mxu0 }
 0x108   :  { %v138_v14 = vpop.f32.mrb[2].mxu0 }
 0x109   :  { %vm172_vm1 = vcmp.ge.f32.partialorder %v170_v12, 0.0  ;;  %v174_v15 = vmul.f32 0.2, %v170_v12  ;;  %v171_v16 = vadd.f32 %v194_v10, %v138_v14  ;;  %v223_v17 = vpop.f32.mrb[3].mxu0 }
 0x10b   :  { %v176_v18 = vsel %vm172_vm1, %v170_v12, %v174_v15  ;;  %vm173_vm2 = vcmp.ge.f32.partialorder %v171_v16, 0.0  ;;  %v175_v19 = vmul.f32 0.2, %v171_v16 }
 0x10c   :  { %178 = vst [vmem:[%s314_s3] sm:$0xff] %v176_v18 }
 0x10d   :  { %v177_v20 = vsel %vm173_vm2, %v171_v16, %v175_v19 }
 0x10e   :  { %179 = vst [vmem:[%s314_s3 + $0x8] sm:$0xff] %v177_v20 }
 0x10f   :  { %184 = vsyncpa [#allocation4], 1 }

</bundles_post_ra>
